<compile_context>
chip_gen: v7x
topology: tpu7x:2x2x1
jax: 0.10.0
libtpu: 0.0.40
codegen_flags: <defaults>
</compile_context>

<pallas_src>
import jax
import jax.numpy as jnp
from jax.experimental import pallas as pl
from jax.experimental.pallas import tpu as pltpu


def _round_up(x, m):
    return ((x + m - 1) // m) * m


def lsn_ff_kernel(
    x1_ref, x2_ref,
    w1_ref, b1_ref,
    w3a_ref, w3b_ref, b3_ref,
    w4_ref, b4_ref,
    w56_ref, b56_ref,
    wo_ref, bo_ref,
    out_ref,
):
    f32 = jnp.float32
    x1 = x1_ref[...]
    x2 = x2_ref[...]
    w1 = w1_ref[...]
    b1 = b1_ref[...]

    # shared fc1 applied to both inputs, then ReLU
    h1 = jnp.maximum(jnp.dot(x1, w1, preferred_element_type=f32) + b1, 0.0)
    h2 = jnp.maximum(jnp.dot(x2, w1, preferred_element_type=f32) + b1, 0.0)

    # fc3 on cat([h1, h2]) without the lane-axis concat: split w3 by rows.
    h = (jnp.dot(h1, w3a_ref[...], preferred_element_type=f32)
         + jnp.dot(h2, w3b_ref[...], preferred_element_type=f32)
         + b3_ref[...])
    h = jnp.maximum(h, 0.0)

    # fc4
    h = jnp.maximum(
        jnp.dot(h, w4_ref[...], preferred_element_type=f32) + b4_ref[...], 0.0)

    # fc5 / fc6 fused: h34 = [relu(h@w5+b5) | relu(h@w6+b6)]  -> (TM, 2H)
    h34 = jnp.maximum(
        jnp.dot(h, w56_ref[...], preferred_element_type=f32) + b56_ref[...], 0.0)

    # fcOut1 / fcOut2 fused via block-diagonal weight:
    # out = [h3 @ wo1 + bo1 | h4 @ wo2 + bo2]  -> single lane-dense store.
    out = jnp.dot(h34, wo_ref[...], preferred_element_type=f32) + bo_ref[...]
    out_ref[...] = out.astype(out_ref.dtype)


def fuse_params(p):
    """One-time host-side weight fusion (row-split w3, fused w56, block-diag wo)."""
    H = p["w1"].shape[1]
    out = p["bo1"].shape[-1]
    wo = jnp.zeros((2 * H, 2 * out), p["wo1"].dtype)
    wo = wo.at[:H, :out].set(p["wo1"])
    wo = wo.at[H:, out:].set(p["wo2"])
    return {
        "w1": p["w1"], "b1": p["b1"],
        "w3a": p["w3"][:H], "w3b": p["w3"][H:], "b3": p["b3"],
        "w4": p["w4"], "b4": p["b4"],
        "w56": jnp.concatenate([p["w5"], p["w6"]], axis=1),
        "b56": jnp.concatenate([p["b5"], p["b6"]], axis=1),
        "wo": wo,
        "bo": jnp.concatenate([p["bo1"], p["bo2"]], axis=1),
    }


def lsn_ff_forward(x1, x2, fused, *, tm=512):
    """x1, x2: (B, S, D_in) float32.  fused: output of fuse_params.
    Returns (B, S, 2*output_size)."""
    B, S, D_in = x1.shape
    M = B * S
    out2 = fused["bo"].shape[-1]  # 2 * output_size

    x1f = x1.reshape(M, D_in)
    x2f = x2.reshape(M, D_in)

    # Row tile: big enough to hit HBM roofline, clamped + padded for small M.
    TM = min(tm, _round_up(M, 8))
    Mp = _round_up(M, TM)
    if Mp != M:
        pad = Mp - M
        x1f = jnp.pad(x1f, ((0, pad), (0, 0)))
        x2f = jnp.pad(x2f, ((0, pad), (0, 0)))

    weight_args = (
        fused["w1"], fused["b1"],
        fused["w3a"], fused["w3b"], fused["b3"],
        fused["w4"], fused["b4"],
        fused["w56"], fused["b56"],
        fused["wo"], fused["bo"],
    )

    def row_map(i):
        return (i, 0)

    def const_map(i):
        return (0, 0)

    in_specs = [
        pl.BlockSpec((TM, D_in), row_map),
        pl.BlockSpec((TM, D_in), row_map),
    ]
    # Weights/biases: full-array blocks, constant index_map -> VMEM-resident.
    in_specs += [pl.BlockSpec(w.shape, const_map) for w in weight_args]

    out = pl.pallas_call(
        lsn_ff_kernel,
        out_shape=jax.ShapeDtypeStruct((Mp, out2), jnp.float32),
        grid_spec=pltpu.PrefetchScalarGridSpec(
            num_scalar_prefetch=0,
            grid=(Mp // TM,),
            in_specs=in_specs,
            out_specs=pl.BlockSpec((TM, out2), row_map),
        ),
        compiler_params=pltpu.CompilerParams(
            dimension_semantics=("parallel",),
            vmem_limit_bytes=32 * 1024 * 1024,  # headroom for v7x's 64 MiB VMEM
        ),
    )(x1f, x2f, *weight_args)

    return out[:M].reshape(B, S, out2)


def init_params(key, input_size, hidden_size, output_size=1):
    """Deterministic init mimicking nn.Linear default (uniform +-1/sqrt(fan_in)).
    Weights are stored (fan_in, fan_out); biases are (1, fan_out)."""
    def linear(k, fan_in, fan_out):
        kw, kb = jax.random.split(k)
        bound = 1.0 / jnp.sqrt(fan_in)
        w = jax.random.uniform(kw, (fan_in, fan_out), jnp.float32, -bound, bound)
        b = jax.random.uniform(kb, (1, fan_out), jnp.float32, -bound, bound)
        return w, b

    keys = jax.random.split(key, 7)
    H = hidden_size
    p = {}
    p["w1"], p["b1"] = linear(keys[0], input_size, H)
    p["w3"], p["b3"] = linear(keys[1], 2 * H, H)
    p["w4"], p["b4"] = linear(keys[2], H, H)
    p["w5"], p["b5"] = linear(keys[3], H, H)
    p["w6"], p["b6"] = linear(keys[4], H, H)
    p["wo1"], p["bo1"] = linear(keys[5], H, output_size)
    p["wo2"], p["bo2"] = linear(keys[6], H, output_size)
    return p


def lsn_ff_reference(x1, x2, params):
    """Pure-JAX reference of the PyTorch forward, for correctness check."""
    def lin(x, w, b):
        return x @ w + b

    h1 = jax.nn.relu(lin(x1, params["w1"], params["b1"]))
    h2 = jax.nn.relu(lin(x2, params["w1"], params["b1"]))
    h = jnp.concatenate([h1, h2], axis=2)
    h = jax.nn.relu(lin(h, params["w3"], params["b3"]))
    h = jax.nn.relu(lin(h, params["w4"], params["b4"]))
    h3 = jax.nn.relu(lin(h, params["w5"], params["b5"]))
    h4 = jax.nn.relu(lin(h, params["w6"], params["b6"]))
    o1 = lin(h3, params["wo1"], params["bo1"])
    o2 = lin(h4, params["wo2"], params["bo2"])
    return jnp.concatenate([o1, o2], axis=2)


if __name__ == "__main__":
    B, S = 2, 8
    input_size, hidden_size, output_size = 16, 32, 1

    key = jax.random.PRNGKey(0)
    k_params, k_x1, k_x2 = jax.random.split(key, 3)

    params = init_params(k_params, input_size, hidden_size, output_size)
    fused = fuse_params(params)
    x1 = jax.random.normal(k_x1, (B, S, input_size), jnp.float32)
    x2 = jax.random.normal(k_x2, (B, S, input_size), jnp.float32)

    out = lsn_ff_forward(x1, x2, fused)
    out = jax.block_until_ready(out)

    ref = lsn_ff_reference(x1, x2, params)
    assert out.shape == (B, S, 2 * output_size), out.shape
    assert jnp.allclose(out, ref, atol=1e-4, rtol=1e-4), "mismatch vs reference"

    print("KERNEL_OK")
</pallas_src>

<mosaic_0001>
module attributes {stable_mosaic.version = 11 : i64} {
  func.func @lsn_ff_kernel(%arg0: i32, %arg1: memref<16x16xf32, #tpu.memory_space<vmem>>, %arg2: memref<16x16xf32, #tpu.memory_space<vmem>>, %arg3: memref<16x32xf32, #tpu.memory_space<vmem>>, %arg4: memref<1x32xf32, #tpu.memory_space<vmem>>, %arg5: memref<32x32xf32, #tpu.memory_space<vmem>>, %arg6: memref<32x32xf32, #tpu.memory_space<vmem>>, %arg7: memref<1x32xf32, #tpu.memory_space<vmem>>, %arg8: memref<32x32xf32, #tpu.memory_space<vmem>>, %arg9: memref<1x32xf32, #tpu.memory_space<vmem>>, %arg10: memref<32x64xf32, #tpu.memory_space<vmem>>, %arg11: memref<1x64xf32, #tpu.memory_space<vmem>>, %arg12: memref<64x2xf32, #tpu.memory_space<vmem>>, %arg13: memref<1x2xf32, #tpu.memory_space<vmem>>, %arg14: memref<16x2xf32, #tpu.memory_space<vmem>>) attributes {dimension_semantics = [#tpu.dimension_semantics<parallel>], iteration_bounds = array<i64: 1>, scalar_prefetch = 0 : i64, scratch_operands = 0 : i64, tpu.core_type = #tpu.core_type<tc>, window_params = [{transform_indices = @transform_0, window_bounds = array<i64: 16, 16>}, {transform_indices = @transform_1, window_bounds = array<i64: 16, 16>}, {pipeline_mode = #tpu.pipeline_mode<synchronous>, transform_indices = @transform_2, window_bounds = array<i64: 16, 32>}, {pipeline_mode = #tpu.pipeline_mode<synchronous>, transform_indices = @transform_3, window_bounds = array<i64: 1, 32>}, {pipeline_mode = #tpu.pipeline_mode<synchronous>, transform_indices = @transform_4, window_bounds = array<i64: 32, 32>}, {pipeline_mode = #tpu.pipeline_mode<synchronous>, transform_indices = @transform_5, window_bounds = array<i64: 32, 32>}, {pipeline_mode = #tpu.pipeline_mode<synchronous>, transform_indices = @transform_6, window_bounds = array<i64: 1, 32>}, {pipeline_mode = #tpu.pipeline_mode<synchronous>, transform_indices = @transform_7, window_bounds = array<i64: 32, 32>}, {pipeline_mode = #tpu.pipeline_mode<synchronous>, transform_indices = @transform_8, window_bounds = array<i64: 1, 32>}, {pipeline_mode = #tpu.pipeline_mode<synchronous>, transform_indices = @transform_9, window_bounds = array<i64: 32, 64>}, {pipeline_mode = #tpu.pipeline_mode<synchronous>, transform_indices = @transform_10, window_bounds = array<i64: 1, 64>}, {pipeline_mode = #tpu.pipeline_mode<synchronous>, transform_indices = @transform_11, window_bounds = array<i64: 64, 2>}, {pipeline_mode = #tpu.pipeline_mode<synchronous>, transform_indices = @transform_12, window_bounds = array<i64: 1, 2>}, {transform_indices = @transform_13, window_bounds = array<i64: 16, 2>}]} {
    %c0 = arith.constant 0 : index
    %c0_0 = arith.constant 0 : index
    %0 = vector.load %arg1[%c0, %c0_0] : memref<16x16xf32, #tpu.memory_space<vmem>>, vector<16x16xf32>
    %c0_1 = arith.constant 0 : index
    %c0_2 = arith.constant 0 : index
    %1 = vector.load %arg2[%c0_1, %c0_2] : memref<16x16xf32, #tpu.memory_space<vmem>>, vector<16x16xf32>
    %c0_3 = arith.constant 0 : index
    %c0_4 = arith.constant 0 : index
    %2 = vector.load %arg3[%c0_3, %c0_4] : memref<16x32xf32, #tpu.memory_space<vmem>>, vector<16x32xf32>
    %c0_5 = arith.constant 0 : index
    %c0_6 = arith.constant 0 : index
    %3 = vector.load %arg4[%c0_5, %c0_6] : memref<1x32xf32, #tpu.memory_space<vmem>>, vector<1x32xf32>
    %cst = arith.constant dense<0.000000e+00> : vector<16x32xf32>
    %4 = tpu.matmul %0, %2, %cst {dimension_numbers = #tpu.dot_dimension_numbers<[1], [0], [0], [1], [0, 0, 1, 1], [], []>} : vector<16x16xf32>, vector<16x32xf32>, vector<16x32xf32> -> vector<16x32xf32>
    %5 = vector.broadcast %3 : vector<1x32xf32> to vector<16x32xf32>
    %6 = arith.addf %4, %5 : vector<16x32xf32>
    %cst_7 = arith.constant 0.000000e+00 : f32
    %7 = vector.broadcast %cst_7 : f32 to vector<16x32xf32>
    %8 = arith.maximumf %6, %7 : vector<16x32xf32>
    %cst_8 = arith.constant dense<0.000000e+00> : vector<16x32xf32>
    %9 = tpu.matmul %1, %2, %cst_8 {dimension_numbers = #tpu.dot_dimension_numbers<[1], [0], [0], [1], [0, 0, 1, 1], [], []>} : vector<16x16xf32>, vector<16x32xf32>, vector<16x32xf32> -> vector<16x32xf32>
    %10 = vector.broadcast %3 : vector<1x32xf32> to vector<16x32xf32>
    %11 = arith.addf %9, %10 : vector<16x32xf32>
    %cst_9 = arith.constant 0.000000e+00 : f32
    %12 = vector.broadcast %cst_9 : f32 to vector<16x32xf32>
    %13 = arith.maximumf %11, %12 : vector<16x32xf32>
    %c0_10 = arith.constant 0 : index
    %c0_11 = arith.constant 0 : index
    %14 = vector.load %arg5[%c0_10, %c0_11] : memref<32x32xf32, #tpu.memory_space<vmem>>, vector<32x32xf32>
    %cst_12 = arith.constant dense<0.000000e+00> : vector<16x32xf32>
    %15 = tpu.matmul %8, %14, %cst_12 {dimension_numbers = #tpu.dot_dimension_numbers<[1], [0], [0], [1], [0, 0, 1, 1], [], []>} : vector<16x32xf32>, vector<32x32xf32>, vector<16x32xf32> -> vector<16x32xf32>
    %c0_13 = arith.constant 0 : index
    %c0_14 = arith.constant 0 : index
    %16 = vector.load %arg6[%c0_13, %c0_14] : memref<32x32xf32, #tpu.memory_space<vmem>>, vector<32x32xf32>
    %cst_15 = arith.constant dense<0.000000e+00> : vector<16x32xf32>
    %17 = tpu.matmul %13, %16, %cst_15 {dimension_numbers = #tpu.dot_dimension_numbers<[1], [0], [0], [1], [0, 0, 1, 1], [], []>} : vector<16x32xf32>, vector<32x32xf32>, vector<16x32xf32> -> vector<16x32xf32>
    %18 = arith.addf %15, %17 : vector<16x32xf32>
    %c0_16 = arith.constant 0 : index
    %c0_17 = arith.constant 0 : index
    %19 = vector.load %arg7[%c0_16, %c0_17] : memref<1x32xf32, #tpu.memory_space<vmem>>, vector<1x32xf32>
    %20 = vector.broadcast %19 : vector<1x32xf32> to vector<16x32xf32>
    %21 = arith.addf %18, %20 : vector<16x32xf32>
    %cst_18 = arith.constant 0.000000e+00 : f32
    %22 = vector.broadcast %cst_18 : f32 to vector<16x32xf32>
    %23 = arith.maximumf %21, %22 : vector<16x32xf32>
    %c0_19 = arith.constant 0 : index
    %c0_20 = arith.constant 0 : index
    %24 = vector.load %arg8[%c0_19, %c0_20] : memref<32x32xf32, #tpu.memory_space<vmem>>, vector<32x32xf32>
    %cst_21 = arith.constant dense<0.000000e+00> : vector<16x32xf32>
    %25 = tpu.matmul %23, %24, %cst_21 {dimension_numbers = #tpu.dot_dimension_numbers<[1], [0], [0], [1], [0, 0, 1, 1], [], []>} : vector<16x32xf32>, vector<32x32xf32>, vector<16x32xf32> -> vector<16x32xf32>
    %c0_22 = arith.constant 0 : index
    %c0_23 = arith.constant 0 : index
    %26 = vector.load %arg9[%c0_22, %c0_23] : memref<1x32xf32, #tpu.memory_space<vmem>>, vector<1x32xf32>
    %27 = vector.broadcast %26 : vector<1x32xf32> to vector<16x32xf32>
    %28 = arith.addf %25, %27 : vector<16x32xf32>
    %cst_24 = arith.constant 0.000000e+00 : f32
    %29 = vector.broadcast %cst_24 : f32 to vector<16x32xf32>
    %30 = arith.maximumf %28, %29 : vector<16x32xf32>
    %c0_25 = arith.constant 0 : index
    %c0_26 = arith.constant 0 : index
    %31 = vector.load %arg10[%c0_25, %c0_26] : memref<32x64xf32, #tpu.memory_space<vmem>>, vector<32x64xf32>
    %cst_27 = arith.constant dense<0.000000e+00> : vector<16x64xf32>
    %32 = tpu.matmul %30, %31, %cst_27 {dimension_numbers = #tpu.dot_dimension_numbers<[1], [0], [0], [1], [0, 0, 1, 1], [], []>} : vector<16x32xf32>, vector<32x64xf32>, vector<16x64xf32> -> vector<16x64xf32>
    %c0_28 = arith.constant 0 : index
    %c0_29 = arith.constant 0 : index
    %33 = vector.load %arg11[%c0_28, %c0_29] : memref<1x64xf32, #tpu.memory_space<vmem>>, vector<1x64xf32>
    %34 = vector.broadcast %33 : vector<1x64xf32> to vector<16x64xf32>
    %35 = arith.addf %32, %34 : vector<16x64xf32>
    %cst_30 = arith.constant 0.000000e+00 : f32
    %36 = vector.broadcast %cst_30 : f32 to vector<16x64xf32>
    %37 = arith.maximumf %35, %36 : vector<16x64xf32>
    %c0_31 = arith.constant 0 : index
    %c0_32 = arith.constant 0 : index
    %38 = vector.load %arg12[%c0_31, %c0_32] : memref<64x2xf32, #tpu.memory_space<vmem>>, vector<64x2xf32>
    %cst_33 = arith.constant dense<0.000000e+00> : vector<16x2xf32>
    %39 = tpu.matmul %37, %38, %cst_33 {dimension_numbers = #tpu.dot_dimension_numbers<[1], [0], [0], [1], [0, 0, 1, 1], [], []>} : vector<16x64xf32>, vector<64x2xf32>, vector<16x2xf32> -> vector<16x2xf32>
    %c0_34 = arith.constant 0 : index
    %c0_35 = arith.constant 0 : index
    %40 = vector.load %arg13[%c0_34, %c0_35] : memref<1x2xf32, #tpu.memory_space<vmem>>, vector<1x2xf32>
    %41 = vector.broadcast %40 : vector<1x2xf32> to vector<16x2xf32>
    %42 = arith.addf %39, %41 : vector<16x2xf32>
    %c0_36 = arith.constant 0 : index
    %c0_37 = arith.constant 0 : index
    %43 = vector.load %arg14[%c0_36, %c0_37] : memref<16x2xf32, #tpu.memory_space<vmem>>, vector<16x2xf32>
    tpu.vector_store %arg14[%c0_36, %c0_37], %42 {strides = array<i32>} : memref<16x2xf32, #tpu.memory_space<vmem>>, vector<16x2xf32>,
    return
  }
  func.func @transform_0(%arg0: i32) -> (i32, i32) {
    %c0_i32 = arith.constant 0 : i32
    %c0_i32_0 = arith.constant 0 : i32
    return %arg0, %c0_i32 : i32, i32
  }
  func.func @transform_1(%arg0: i32) -> (i32, i32) {
    %c0_i32 = arith.constant 0 : i32
    %c0_i32_0 = arith.constant 0 : i32
    return %arg0, %c0_i32 : i32, i32
  }
  func.func @transform_2(%arg0: i32) -> (i32, i32) {
    %c0_i32 = arith.constant 0 : i32
    %c0_i32_0 = arith.constant 0 : i32
    %c0_i32_1 = arith.constant 0 : i32
    return %c0_i32, %c0_i32_0 : i32, i32
  }
  func.func @transform_3(%arg0: i32) -> (i32, i32) {
    %c0_i32 = arith.constant 0 : i32
    %c0_i32_0 = arith.constant 0 : i32
    %c0_i32_1 = arith.constant 0 : i32
    return %c0_i32, %c0_i32_0 : i32, i32
  }
  func.func @transform_4(%arg0: i32) -> (i32, i32) {
    %c0_i32 = arith.constant 0 : i32
    %c0_i32_0 = arith.constant 0 : i32
    %c0_i32_1 = arith.constant 0 : i32
    return %c0_i32, %c0_i32_0 : i32, i32
  }
  func.func @transform_5(%arg0: i32) -> (i32, i32) {
    %c0_i32 = arith.constant 0 : i32
    %c0_i32_0 = arith.constant 0 : i32
    %c0_i32_1 = arith.constant 0 : i32
    return %c0_i32, %c0_i32_0 : i32, i32
  }
  func.func @transform_6(%arg0: i32) -> (i32, i32) {
    %c0_i32 = arith.constant 0 : i32
    %c0_i32_0 = arith.constant 0 : i32
    %c0_i32_1 = arith.constant 0 : i32
    return %c0_i32, %c0_i32_0 : i32, i32
  }
  func.func @transform_7(%arg0: i32) -> (i32, i32) {
    %c0_i32 = arith.constant 0 : i32
    %c0_i32_0 = arith.constant 0 : i32
    %c0_i32_1 = arith.constant 0 : i32
    return %c0_i32, %c0_i32_0 : i32, i32
  }
  func.func @transform_8(%arg0: i32) -> (i32, i32) {
    %c0_i32 = arith.constant 0 : i32
    %c0_i32_0 = arith.constant 0 : i32
    %c0_i32_1 = arith.constant 0 : i32
    return %c0_i32, %c0_i32_0 : i32, i32
  }
  func.func @transform_9(%arg0: i32) -> (i32, i32) {
    %c0_i32 = arith.constant 0 : i32
    %c0_i32_0 = arith.constant 0 : i32
    %c0_i32_1 = arith.constant 0 : i32
    return %c0_i32, %c0_i32_0 : i32, i32
  }
  func.func @transform_10(%arg0: i32) -> (i32, i32) {
    %c0_i32 = arith.constant 0 : i32
    %c0_i32_0 = arith.constant 0 : i32
    %c0_i32_1 = arith.constant 0 : i32
    return %c0_i32, %c0_i32_0 : i32, i32
  }
  func.func @transform_11(%arg0: i32) -> (i32, i32) {
    %c0_i32 = arith.constant 0 : i32
    %c0_i32_0 = arith.constant 0 : i32
    %c0_i32_1 = arith.constant 0 : i32
    return %c0_i32, %c0_i32_0 : i32, i32
  }
  func.func @transform_12(%arg0: i32) -> (i32, i32) {
    %c0_i32 = arith.constant 0 : i32
    %c0_i32_0 = arith.constant 0 : i32
    %c0_i32_1 = arith.constant 0 : i32
    return %c0_i32, %c0_i32_0 : i32, i32
  }
  func.func @transform_13(%arg0: i32) -> (i32, i32) {
    %c0_i32 = arith.constant 0 : i32
    %c0_i32_0 = arith.constant 0 : i32
    return %arg0, %c0_i32 : i32, i32
  }
}

</mosaic_0001>

<bundles_post_ra>
// kernel: tpu_custom_call.1
= control target key start
LH: loop header
LB: loop body
LE: loop exit
PB: predicated region body
PF: predicated region fallthrough
CT: control target
= control target key end

     0   :  { %18 = vsyncpa [#allocation3], 0  ;;  %s1432_s0 = inlined_call_operand.hbm [shape: f32[16,16], index: 0, kind: input, shape index: {}]   ;;  %s1433_s1 = inlined_call_operand.hbm [shape: f32[16,16], index: 1, kind: input, shape index: {}]   ;;  %s1434_s2 = inlined_call_operand.hbm [shape: f32[16,32], index: 2, kind: input, shape index: {}]   ;;  %s1435_s3 = inlined_call_operand.hbm [shape: f32[1,32], index: 3, kind: input, shape index: {}]   ;;  %s1436_s4 = inlined_call_operand.vmem [shape: f32[32,32], index: 4, kind: input, shape index: {}]   ;;  %s1437_s5 = inlined_call_operand.vmem [shape: f32[32,32], index: 5, kind: input, shape index: {}]   ;;  %s1438_s6 = inlined_call_operand.hbm [shape: f32[1,32], index: 6, kind: input, shape index: {}]   ;;  %s1439_s7 = inlined_call_operand.hbm [shape: f32[32,32], index: 7, kind: input, shape index: {}]   ;;  %s1440_s8 = inlined_call_operand.hbm [shape: f32[1,32], index: 8, kind: input, shape index: {}]   ;;  %s1441_s9 = inlined_call_operand.vmem [shape: f32[32,64], index: 9, kind: input, shape index: {}]   ;;  %s1442_s10 = inlined_call_operand.vmem [shape: f32[1,64], index: 10, kind: input, shape index: {}]   ;;  %s1443_s11 = inlined_call_operand.vmem [shape: f32[64,2], index: 11, kind: input, shape index: {}]   ;;  %s1444_s12 = inlined_call_operand.vmem [shape: f32[1,2], index: 12, kind: input, shape index: {}]   ;;  %s1445_s13 = inlined_call_operand.vmem [shape: f32[16,2], index: 13, kind: output, shape index: {}]  }
   0x1   :  { %19 = vsyncpa [#allocation5], 0 }
   0x2   :  { %20 = vsyncpa [#allocation8], 0 }
   0x3   :  { %21 = vsyncpa [#allocation11], 0  ;;  %s1158_s25 = smov [#allocation4]   ;;  %s1159_s27 = smov [#allocation7]  }
   0x4   :  { %s39_s26 = sshll.u32 %s1158_s25, 4  ;;  %s64_s28 = sshll.u32 %s1159_s27, 4  ;;  %s40_s26 = int_to_ptr.vmem [resolvable:$true] %s39_s26  ;;  %s1237_s28 = int_to_ptr.vmem [resolvable:$true] %s64_s28 }
   0x5   :  { %s996_s14 = scalar_lea.hbm %s1433_s1, 256 }
   0x6   :  { %p997_p0 = scmp.ne.s32.totalorder %s1433_s1, %s996_s14  ;;  %p1000_p1 = scmp.lt.u32.totalorder %s996_s14, %s1433_s1 }
   0x8   :  { %p1002_p2 = pnand %p1000_p1, %p997_p0 }
   0xa   :  { %1005 = shalt.err (!%p1002_p2)
}
   0xb   :  { %s1006_s19 = scalar_lea.vmem %s40_s26, 256  ;;  %p1011_p4 = scmp.lt.s32.totalorder %s40_s26, %s40_s26 }
   0xc   :  { %p1007_p3 = scmp.ne.s32.totalorder %s40_s26, %s1006_s19  ;;  %p1012_p5 = scmp.lt.s32.totalorder %s1006_s19, %s1006_s19 }
   0xe   :  { %p1013_p6 = por %p1012_p5, %p1011_p4 }
  0x10   :  { %p1014_p7 = pnand %p1013_p6, %p1007_p3 }
  0x12   :  { %1017 = shalt.err (!%p1014_p7)
}
  0x13   :  { %s1160_s20 = smov 128   ;;  %s1161_s21 = smov 8  }
  0x14   :  { %45 = dma.hbm_to_vmem [thread:$0]  %s1433_s1, 256, %s40_s26, [#allocation5], %s1160_s20, %s1160_s20, %s1161_s21  }
  0x15   :  { %s1018_s27 = scalar_lea.hbm %s1435_s3, 16 }
  0x16   :  { %p1019_p8 = scmp.ne.s32.totalorder %s1435_s3, %s1018_s27  ;;  %p1022_p9 = scmp.lt.u32.totalorder %s1018_s27, %s1435_s3 }
  0x18   :  { %p1024_p10 = pnand %p1022_p9, %p1019_p8 }
  0x1a   :  { %1027 = shalt.err (!%p1024_p10)
}
  0x1b   :  { %s1028_s16 = scalar_lea.vmem %s1237_s28, 16  ;;  %s1032_s1 = scalar_lea.vmem %s1237_s28, 32 }
  0x1c   :  { %p1029_p11 = scmp.ne.s32.totalorder %s1237_s28, %s1028_s16  ;;  %p1033_p12 = scmp.lt.s32.totalorder %s1237_s28, %s1237_s28 }
  0x1d   :  { %p1034_p13 = scmp.lt.s32.totalorder %s1032_s1, %s1028_s16 }
  0x1f   :  { %p1035_p0 = por %p1034_p13, %p1033_p12 }
  0x21   :  { %p1036_p1 = pnand %p1035_p0, %p1029_p11 }
  0x23   :  { %1039 = shalt.err (!%p1036_p1)
}
  0x24   :  { %67 = dma.hbm_to_vmem [thread:$0]  %s1435_s3, 16, %s1237_s28, [#allocation8]  }
  0x25   :  { %s1162_s18 = smov [#allocation10]   ;;  %s1163_s22 = smov [#allocation2]  }
  0x26   :  { %s87_s19 = sshll.u32 %s1162_s18, 4  ;;  %s27_s23 = sshll.u32 %s1163_s22, 4  ;;  %s88_s19 = int_to_ptr.vmem [resolvable:$true] %s87_s19  ;;  %s1272_s23 = int_to_ptr.vmem [resolvable:$true] %s27_s23 }
  0x27   :  { %s1040_s27 = scalar_lea.hbm %s1439_s7, 512 }
  0x28   :  { %p1041_p2 = scmp.ne.s32.totalorder %s1439_s7, %s1040_s27  ;;  %p1044_p3 = scmp.lt.u32.totalorder %s1040_s27, %s1439_s7 }
  0x2a   :  { %p1046_p4 = pnand %p1044_p3, %p1041_p2 }
  0x2c   :  { %1049 = shalt.err (!%p1046_p4)
}
  0x2d   :  { %s1050_s3 = scalar_lea.vmem %s88_s19, 512  ;;  %p1055_p6 = scmp.lt.s32.totalorder %s88_s19, %s88_s19 }
  0x2e   :  { %p1051_p5 = scmp.ne.s32.totalorder %s88_s19, %s1050_s3  ;;  %p1056_p7 = scmp.lt.s32.totalorder %s1050_s3, %s1050_s3 }
  0x30   :  { %p1057_p8 = por %p1056_p7, %p1055_p6 }
  0x32   :  { %p1058_p9 = pnand %p1057_p8, %p1051_p5 }
  0x34   :  { %1061 = shalt.err (!%p1058_p9)
}
  0x35   :  { %93 = dma.hbm_to_vmem [thread:$0]  %s1439_s7, 512, %s88_s19, [#allocation11], %s1160_s20, %s1160_s20, %s1161_s21  }
  0x36   :  { %s1062_s17 = scalar_lea.hbm %s1432_s0, 256 }
  0x37   :  { %p1063_p10 = scmp.ne.s32.totalorder %s1432_s0, %s1062_s17  ;;  %p1066_p11 = scmp.lt.u32.totalorder %s1062_s17, %s1432_s0 }
  0x39   :  { %p1068_p12 = pnand %p1066_p11, %p1063_p10 }
  0x3b   :  { %1071 = shalt.err (!%p1068_p12)
}
  0x3c   :  { %s1072_s27 = scalar_lea.vmem %s1272_s23, 256  ;;  %p1077_p0 = scmp.lt.s32.totalorder %s1272_s23, %s1272_s23 }
  0x3d   :  { %p1073_p13 = scmp.ne.s32.totalorder %s1272_s23, %s1072_s27  ;;  %p1078_p1 = scmp.lt.s32.totalorder %s1072_s27, %s1072_s27 }
  0x3f   :  { %p1079_p2 = por %p1078_p1, %p1077_p0 }
  0x41   :  { %p1080_p3 = pnand %p1079_p2, %p1073_p13 }
  0x43   :  { %1083 = shalt.err (!%p1080_p3)
}
  0x44   :  { %33 = dma.hbm_to_vmem [thread:$0]  %s1432_s0, 256, %s1272_s23, [#allocation3], %s1160_s20, %s1160_s20, %s1161_s21  }
  0x45   :  { %s1164_s29 = smov [#allocation6]   ;;  %s1165_s14 = smov [#allocation9]  }
  0x46   :  { %s51_s30 = sshll.u32 %s1164_s29, 4  ;;  %s78_s15 = sshll.u32 %s1165_s14, 4  ;;  %s52_s30 = int_to_ptr.vmem [resolvable:$true] %s51_s30  ;;  %s79_s15 = int_to_ptr.vmem [resolvable:$true] %s78_s15 }
  0x47   :  { %s1084_s16 = scalar_lea.hbm %s1434_s2, 256 }
  0x48   :  { %p1085_p4 = scmp.ne.s32.totalorder %s1434_s2, %s1084_s16  ;;  %p1088_p5 = scmp.lt.u32.totalorder %s1084_s16, %s1434_s2 }
  0x4a   :  { %p1090_p6 = pnand %p1088_p5, %p1085_p4 }
  0x4c   :  { %1093 = shalt.err (!%p1090_p6)
}
  0x4d   :  { %s1094_s0 = scalar_lea.vmem %s52_s30, 256  ;;  %p1099_p8 = scmp.lt.s32.totalorder %s52_s30, %s52_s30 }
  0x4e   :  { %p1095_p7 = scmp.ne.s32.totalorder %s52_s30, %s1094_s0  ;;  %p1100_p9 = scmp.lt.s32.totalorder %s1094_s0, %s1094_s0 }
  0x50   :  { %p1101_p10 = por %p1100_p9, %p1099_p8 }
  0x52   :  { %p1102_p11 = pnand %p1101_p10, %p1095_p7 }
  0x54   :  { %1105 = shalt.err (!%p1102_p11)
}
  0x55   :  { %57 = dma.hbm_to_vmem [thread:$0]  %s1434_s2, 256, %s52_s30, [#allocation5], %s1160_s20, %s1160_s20, %s1161_s21  }
  0x56   :  { %s1106_s27 = scalar_lea.hbm %s1438_s6, 16 }
  0x57   :  { %p1107_p12 = scmp.ne.s32.totalorder %s1438_s6, %s1106_s27  ;;  %p1110_p13 = scmp.lt.u32.totalorder %s1106_s27, %s1438_s6 }
  0x59   :  { %p1112_p0 = pnand %p1110_p13, %p1107_p12 }
  0x5b   :  { %1115 = shalt.err (!%p1112_p0)
}
  0x5c   :  { %s1116_s3 = scalar_lea.vmem %s79_s15, 16  ;;  %s1120_s28 = scalar_lea.vmem %s79_s15, 32 }
  0x5d   :  { %p1117_p1 = scmp.ne.s32.totalorder %s79_s15, %s1116_s3  ;;  %p1121_p2 = scmp.lt.s32.totalorder %s79_s15, %s79_s15 }
  0x5e   :  { %p1122_p3 = scmp.lt.s32.totalorder %s1120_s28, %s1116_s3 }
  0x60   :  { %p1123_p4 = por %p1122_p3, %p1121_p2 }
  0x62   :  { %p1124_p5 = pnand %p1123_p4, %p1117_p1 }
  0x64   :  { %1127 = shalt.err (!%p1124_p5)
}
  0x65   :  { %81 = dma.hbm_to_vmem [thread:$0]  %s1438_s6, 16, %s79_s15, [#allocation8]  }
  0x66   :  { %s1166_s21 = smov [#allocation12]   ;;  %s1128_s26 = scalar_lea.hbm %s1440_s8, 16 }
  0x67   :  { %s100_s30 = sshll.u32 %s1166_s21, 4  ;;  %p1129_p6 = scmp.ne.s32.totalorder %s1440_s8, %s1128_s26  ;;  %s101_s30 = int_to_ptr.vmem [resolvable:$true] %s100_s30 }
  0x68   :  { %p1132_p7 = scmp.lt.u32.totalorder %s1128_s26, %s1440_s8 }
  0x6a   :  { %p1134_p8 = pnand %p1132_p7, %p1129_p6 }
  0x6c   :  { %1137 = shalt.err (!%p1134_p8)
}
  0x6d   :  { %s1138_s22 = scalar_lea.vmem %s101_s30, 16  ;;  %s1142_s6 = scalar_lea.vmem %s101_s30, 32 }
  0x6e   :  { %p1139_p9 = scmp.ne.s32.totalorder %s101_s30, %s1138_s22  ;;  %p1143_p10 = scmp.lt.s32.totalorder %s101_s30, %s101_s30 }
  0x6f   :  { %p1144_p11 = scmp.lt.s32.totalorder %s1142_s6, %s1138_s22 }
  0x71   :  { %p1145_p12 = por %p1144_p11, %p1143_p10 }
  0x73   :  { %p1146_p13 = pnand %p1145_p12, %p1139_p9 }
  0x75   :  { %1149 = shalt.err (!%p1146_p13)
}
  0x76   :  { %103 = dma.hbm_to_vmem [thread:$0]  %s1440_s8, 16, %s101_s30, [#allocation11]  }
  0x77   :  { %1150 = dma.done.wait [#allocation3], 256  }
  0x78   :  { %1151 = vsyncadd [#allocation3], 4294967040 }
  0x79   :  { %1152 = dma.done.wait [#allocation5], 512  }
  0x7a   :  { %1153 = vsyncadd [#allocation5], 4294966784 }
  0x7b   :  { %1154 = dma.done.wait [#allocation8], 32  }
  0x7c   :  { %1155 = vsyncadd [#allocation8], 4294967264 }
  0x7d   :  { %1156 = dma.done.wait [#allocation11], 528  }
  0x7e   :  { %1157 = vsyncadd [#allocation11], 4294966768  ;;  %vm146_vm0 = vcmask 130048   ;;  %v137_v0 = vld [vmem:[#allocation6] sm:$0xff]  ;;  %v138_v1 = vld [vmem:[#allocation6 + $0x8] sm:$0xff]  ;;  %vm321_vm1 = vcmask 261120  }
  0x7f   :  { %v133_v2 = vld [vmem:[#allocation2] sm:$0xff]  ;;  %v929_v3 = vpack.c.bf16 %v138_v1, %v137_v0  ;;  %v135_v4 = vld [vmem:[#allocation4] sm:$0xff]  ;;  %v318_v6 = vld [vmem:[%s1437_s5 + $0x8] sm:$0xff]  ;;  %vm698_vm2 = vcmask 523264   ;;  %vm780_vm3 = vcmask 15360  }
  0x80   :  { %856 = vmatprep.mubr.msk.f32.mxu0 %vm146_vm0, %v133_v2  ;;  %863 = vmatprep.mubr.msk.f32.mxu1 %vm146_vm0, %v135_v4  ;;  %v317_v5 = vld [vmem:[%s1437_s5] sm:$0xff]  ;;  %v314_v9 = vld [vmem:[%s1436_s4 + $0x8] sm:$0xff]  ;;  %v136_v11 = vld [vmem:[#allocation4 + $0x8] sm:$0xff] }
  0x81   :  { %v313_v7 = vld [vmem:[%s1436_s4] sm:$0xff]  ;;  %930 = vmatprep.subr.bf16.mxu0 %v929_v3  ;;  %934 = vmatprep.subr.bf16.mxu1 %v929_v3  ;;  %v937_v8 = vpack.c.bf16 %v318_v6, %v317_v5  ;;  %v134_v10 = vld [vmem:[#allocation2 + $0x8] sm:$0xff]  ;;  %v319_v13 = vld [vmem:[%s1437_s5 + $0x10] sm:$0xff] }
  0x82   :  { %932 = vmatpush3.bf16.msra.mxu0 %v929_v3  ;;  %936 = vmatpush3.bf16.msra.mxu1 %v929_v3  ;;  %v945_v12 = vpack.c.bf16 %v314_v9, %v313_v7  ;;  %v320_v14 = vld [vmem:[%s1437_s5 + $0x18] sm:$0xff]  ;;  %v315_v16 = vld [vmem:[%s1436_s4 + $0x10] sm:$0xff]  ;;  %v497_v35 = vld [vmem:[#allocation10 + $0x10] sm:$0xff] }
  0x83   :  { %938 = vmatprep.subr.bf16.mxu1 %v937_v8  ;;  %v941_v15 = vpack.c.bf16 %v320_v14, %v319_v13  ;;  %v316_v17 = vld [vmem:[%s1436_s4 + $0x18] sm:$0xff]  ;;  %v791_v19 = vld [vmem:[#allocation7] ss:$0 sm:$0xff]  ;;  %v589_v38 = vld [vmem:[%s1441_s9] sm:$0xff] }
  0x84   :  { %946 = vmatprep.subr.bf16.mxu0 %v945_v12  ;;  %v949_v18 = vpack.c.bf16 %v316_v17, %v315_v16  ;;  %v495_v32 = vld [vmem:[#allocation10] sm:$0xff]  ;;  %v496_v33 = vld [vmem:[#allocation10 + $0x8] sm:$0xff]  ;;  %v498_v36 = vld [vmem:[#allocation10 + $0x18] sm:$0xff] }
  0x85   :  { %857 = vmatmul.mubr.msk.f32.vlgmr.msra.gmra.mrb[0].mxu0 %vm146_vm0, %v134_v10  ;;  %864 = vmatmul.mubr.msk.f32.vlgmr.msra.gmra.mrb[0].mxu1 %vm146_vm0, %v136_v11  ;;  %v953_v34 = vpack.c.bf16 %v496_v33, %v495_v32  ;;  %v957_v37 = vpack.c.bf16 %v498_v36, %v497_v35  ;;  %v590_v39 = vld [vmem:[%s1441_s9 + $0x8] sm:$0xff]  ;;  %v800_v43 = vld [vmem:[#allocation9] ss:$0 sm:$0xff]  ;;  %v592_v53 = vld [vmem:[%s1441_s9 + $0x18] sm:$0xff] }
  0x86   :  { %940 = vmatpush3.bf16.msra.mxu1 %v937_v8  ;;  %948 = vmatpush3.bf16.msra.mxu0 %v945_v12  ;;  %v961_v40 = vpack.c.bf16 %v590_v39, %v589_v38  ;;  %v591_v52 = vld [vmem:[%s1441_s9 + $0x10] sm:$0xff]  ;;  %v683_v55 = vld [vmem:[%s1443_s11] sm:$0xff]  ;;  %v684_v56 = vld [vmem:[%s1443_s11 + $0x8] sm:$0xff] }
  0x87   :  { %942 = vmatprep.subr.bf16.mxu1 %v941_v15  ;;  %950 = vmatprep.subr.bf16.mxu0 %v949_v18  ;;  %v965_v54 = vpack.c.bf16 %v592_v53, %v591_v52  ;;  %v685_v57 = vld [vmem:[%s1443_s11 + $0x10] sm:$0xff]  ;;  %v969_v58 = vpack.c.bf16 %v684_v56, %v683_v55  ;;  %v686_v59 = vld [vmem:[%s1443_s11 + $0x18] sm:$0xff]  ;;  %v687_v61 = vld [vmem:[%s1443_s11 + $0x20] sm:$0xff] }
  0x88   :  { %v973_v60 = vpack.c.bf16 %v686_v59, %v685_v57  ;;  %v688_v62 = vld [vmem:[%s1443_s11 + $0x28] sm:$0xff]  ;;  %v801_v0 = vld [vmem:[#allocation12] ss:$0 sm:$0xff]  ;;  %v690_v8 = vld [vmem:[%s1443_s11 + $0x38] sm:$0xff] }
  0x89   :  { %v977_v63 = vpack.c.bf16 %v688_v62, %v687_v61  ;;  %v689_v7 = vld [vmem:[%s1443_s11 + $0x30] sm:$0xff]  ;;  %v804_v10 = vld [vmem:[%s1442_s10] ss:$0 sm:$0xff] }
  0x8a   :  { %944 = vmatpush3.bf16.msra.mxu1 %v941_v15  ;;  %952 = vmatpush3.bf16.msra.mxu0 %v949_v18  ;;  %v981_v9 = vpack.c.bf16 %v690_v8, %v689_v7  ;;  %v807_v17 = vld [vmem:[%s1444_s12] ss:$0 sm:$0xff] }
  0x8b   :  { %954 = vmatprep.subr.bf16.mxu1 %v953_v34  ;;  %970 = vmatprep.subr.bf16.mxu0 %v969_v58 }
 0x158   :  { %v858_v20 = vpop.f32.mrb[0].mxu0  ;;  %v865_v21 = vpop.f32.mrb[0].mxu1 }
 0x159   :  { %v225_v22 = vadd.f32 %v858_v20, %v791_v19  ;;  %v308_v23 = vadd.f32 %v865_v21, %v791_v19  ;;  %v219_v24 = vpop.f32.mrb[1].mxu0  ;;  %v302_v25 = vpop.f32.mrb[1].mxu1 }
 0x15a   :  { %v220_v26 = vadd.f32 %v791_v19, %v219_v24  ;;  %v303_v27 = vadd.f32 %v791_v19, %v302_v25 }
 0x15b   :  { %v229_v30 = vmax.f32 %v225_v22, 0.0  ;;  %v312_v31 = vmax.f32 %v308_v23, 0.0 }
 0x15c   :  { %v228_v28 = vmax.f32 %v220_v26, 0.0  ;;  %v311_v29 = vmax.f32 %v303_v27, 0.0 }
 0x15e   :  { %874 = vmatprep.mubr.msk.f32.mxu1 %vm321_vm1, %v311_v29  ;;  %885 = vmatprep.mubr.msk.f32.mxu0 %vm321_vm1, %v228_v28 }
 0x15f   :  { %875 = vmatmul.mubr.msk.f32.vlgmr.msra.gmra.mrb[2].mxu1 %vm321_vm1, %v312_v31  ;;  %886 = vmatmul.mubr.msk.f32.vlgmr.msra.gmra.mrb[2].mxu0 %vm321_vm1, %v229_v30 }
 0x160   :  { %956 = vmatpush3.bf16.msra.mxu1 %v953_v34  ;;  %972 = vmatpush3.bf16.msra.mxu0 %v969_v58 }
 0x161   :  { %958 = vmatprep.subr.bf16.mxu1 %v957_v37  ;;  %974 = vmatprep.subr.bf16.mxu0 %v973_v60 }
 0x164   :  { %960 = vmatpush3.bf16.msra.mxu1 %v957_v37  ;;  %976 = vmatpush3.bf16.msra.mxu0 %v973_v60 }
 0x165   :  { %962 = vmatprep.subr.bf16.mxu1 %v961_v40  ;;  %978 = vmatprep.subr.bf16.mxu0 %v977_v63 }
 0x168   :  { %980 = vmatpush3.bf16.msra.mxu0 %v977_v63 }
 0x169   :  { %982 = vmatprep.subr.bf16.mxu0 %v981_v9 }
 0x16c   :  { %984 = vmatpush3.bf16.msra.mxu0 %v981_v9 }
 0x232   :  { %v876_v41 = vpop.f32.mrb[2].mxu1  ;;  %v887_v42 = vpop.f32.mrb[2].mxu0 }
 0x233   :  { %v481_v44 = vadd.f32 %v887_v42, %v876_v41  ;;  %v394_v45 = vpop.f32.mrb[3].mxu1  ;;  %v475_v46 = vpop.f32.mrb[3].mxu0 }
 0x234   :  { %v476_v47 = vadd.f32 %v475_v46, %v394_v45 }
 0x235   :  { %v492_v48 = vadd.f32 %v800_v43, %v481_v44 }
 0x236   :  { %v491_v49 = vadd.f32 %v800_v43, %v476_v47 }
 0x237   :  { %v494_v51 = vmax.f32 %v492_v48, 0.0 }
 0x238   :  { %v493_v50 = vmax.f32 %v491_v49, 0.0 }
 0x23a   :  { %896 = vmatprep.mubr.msk.f32.mxu1 %vm321_vm1, %v493_v50 }
 0x23b   :  { %897 = vmatmul.mubr.msk.f32.vlgmr.msra.gmra.mrb[4].mxu1 %vm321_vm1, %v494_v51 }
 0x23c   :  { %964 = vmatpush3.bf16.msra.mxu1 %v961_v40 }
 0x23d   :  { %966 = vmatprep.subr.bf16.mxu1 %v965_v54 }
 0x240   :  { %968 = vmatpush3.bf16.msra.mxu1 %v965_v54 }
 0x30e   :  { %v898_v1 = vpop.f32.mrb[4].mxu1 }
 0x30f   :  { %v584_v2 = vadd.f32 %v898_v1, %v801_v0  ;;  %v578_v3 = vpop.f32.mrb[5].mxu1 }
 0x310   :  { %v579_v4 = vadd.f32 %v801_v0, %v578_v3 }
 0x311   :  { %v588_v6 = vmax.f32 %v584_v2, 0.0 }
 0x312   :  { %v587_v5 = vmax.f32 %v579_v4, 0.0 }
 0x314   :  { %907 = vmatprep.mubr.msk.f32.mxu1 %vm321_vm1, %v587_v5 }
 0x315   :  { %908 = vmatmul.mubr.msk.f32.vlgmr.msra.gmra.mrb[6].mxu1 %vm321_vm1, %v588_v6 }
 0x3e8   :  { %v909_v11 = vpop.f32.mrb[6].mxu1 }
 0x3e9   :  { %v678_v12 = vadd.f32 %v909_v11, %v804_v10  ;;  %v672_v13 = vpop.f32.mrb[7].mxu1 }
 0x3ea   :  { %v673_v14 = vadd.f32 %v804_v10, %v672_v13 }
 0x3eb   :  { %v682_v16 = vmax.f32 %v678_v12, 0.0 }
 0x3ec   :  { %v681_v15 = vmax.f32 %v673_v14, 0.0 }
 0x3ee   :  { %926 = vmatprep.mubr.msk.f32.mxu0 %vm698_vm2, %v681_v15 }
 0x3ef   :  { %927 = vmatmul.mubr.msk.f32.vlgmr.msra.gmra.mrb[4].mxu0 %vm698_vm2, %v682_v16 }
 0x4c2   :  { %v928_v18 = vpop.f32.mrb[4].mxu0 }
 0x4c3   :  { %v777_v19 = vadd.f32 %v928_v18, %v807_v17  ;;  %v771_v20 = vpop.f32.mrb[5].mxu0 }
 0x4c4   :  { %v772_v21 = vadd.f32 %v807_v17, %v771_v20 }
 0x4c5   :  { %782 = vst.msk [vmem:[%s1445_s13 + $0x8] sm:$0xff] %vm780_vm3, %v777_v19 }
 0x4c6   :  { %781 = vst.msk [vmem:[%s1445_s13] sm:$0xff] %vm780_vm3, %v772_v21 }
 0x4c7   :  { %787 = vsyncpa [#allocation3], 1 }
 0x4c8   :  { %788 = vsyncpa [#allocation5], 1 }
 0x4c9   :  { %789 = vsyncpa [#allocation8], 1 }
 0x4ca   :  { %790 = vsyncpa [#allocation11], 1 }

</bundles_post_ra>
